<compile_context>
chip_gen: v7x
topology: tpu7x:2x2x1
jax: 0.10.0
libtpu: 0.0.40
codegen_flags: <defaults>
</compile_context>

<pallas_src>
import numpy as np

import jax
import jax.numpy as jnp
from jax import lax
from jax.experimental import pallas as pl
from jax.experimental.pallas import tpu as pltpu

MATMUL_DTYPE = jnp.float32   # set to jnp.bfloat16 for the review's MXU option


def _round_up(x, m):
    return (x + m - 1) // m * m


def _shift_masks(H, W):
    """(4, H*W) f32 masks: [col(dw=-1), col(dw=+1), row(dh=-1), row(dh=+1)].

    Each 3x3 tap (dh, dw) is implemented as lane-axis rolls; these masks zero
    exactly the rolled-in (wrapped) positions, so
        row_mask(dh) * roll( col_mask(dw) * roll(x, -dw), -dh*W )
    equals the zero-padded neighbourhood gather x[r+dh, c+dw].
    """
    r = np.arange(H * W) // W
    c = np.arange(H * W) % W
    masks = np.stack([(c - 1 >= 0), (c + 1 < W), (r - 1 >= 0), (r + 1 < H)])
    return jnp.asarray(masks.astype(np.float32))


def _batch_block(N, max_b=8):
    """Largest divisor of N <= max_b keeping grid length >= 2 (v7x: 2 TCs)."""
    best = 1
    for b in range(1, min(max_b, N) + 1):
        if N % b == 0 and (N // b >= 2 or N == 1):
            best = b
    return best


def _make_genblock_kernel(H, W, B):
    HW = H * W

    def kernel(x_ref, masks_ref, w1_ref, w2_ref, chanp_ref,
               noise_ref, style_ref, out_ref):
        col_m1 = masks_ref[0:1, :]
        col_p1 = masks_ref[1:2, :]
        row_m1 = masks_ref[2:3, :]
        row_p1 = masks_ref[3:4, :]

        def im2col(x):
            # 3x3 / pad 1 neighbourhood gather: 8 XLU rolls + 8 mask multiplies
            # (2 column-shift variants, 6 row-masked row shifts).
            xc = {-1: col_m1 * pltpu.roll(x, 1, axis=1),
                  0: x,
                  1: col_p1 * pltpu.roll(x, HW - 1, axis=1)}
            rows = []
            for dh in (-1, 0, 1):
                for dw in (-1, 0, 1):
                    t = xc[dw]
                    if dh != 0:
                        t = pltpu.roll(t, (-dh * W) % HW, axis=1)
                        t = (row_m1 if dh == -1 else row_p1) * t
                    rows.append(t)
            return jnp.concatenate(rows, axis=0).astype(MATMUL_DTYPE)  # (9C, HW)

        def stage(x, w_ref, bias, nweight, noise, ss, sb):
            # WSConv2d (weight-standardisation scale folded into w_ref) as one
            # im2col matmul.
            y = jnp.dot(w_ref[...], im2col(x),
                        preferred_element_type=jnp.float32)       # (Cout, HW)
            # conv bias + InjectNoise + LeakyReLU(0.2)
            y = y + bias + nweight * noise
            y = jnp.where(y >= 0.0, y, 0.2 * y)
            # InstanceNorm2d (affine=False, eps=1e-5), two-pass centred variance
            mean = jnp.sum(y, axis=1, keepdims=True) * (1.0 / HW)
            yc = y - mean
            var = jnp.sum(yc * yc, axis=1, keepdims=True) * (1.0 / HW)
            y = yc * lax.rsqrt(var + 1e-5)
            # AdaIN (style projections precomputed in the wrapper)
            return ss * y + sb

        b1, nw1 = chanp_ref[:, 0:1], chanp_ref[:, 1:2]
        b2, nw2 = chanp_ref[:, 2:3], chanp_ref[:, 3:4]

        for b in range(B):                       # static unroll over the block
            nz = noise_ref[b]                    # (2, HW)
            st = style_ref[b]                    # (Cout, 4) = [ss1, sb1, ss2, sb2]
            h = stage(x_ref[b], w1_ref, b1, nw1, nz[0:1, :], st[:, 0:1], st[:, 1:2])
            out_ref[b] = stage(h, w2_ref, b2, nw2, nz[1:2, :], st[:, 2:3], st[:, 3:4])

    return kernel


def _flatten_conv_weight(w_oihw, scale, cin_pad):
    """(Cout, Cin, 3, 3) -> (Cout, 9*cin_pad), WS scale folded, K = t*cin_pad+ci."""
    cout, cin = w_oihw.shape[:2]
    w_p = jnp.pad(w_oihw, ((0, 0), (0, cin_pad - cin), (0, 0), (0, 0)))
    w_f = jnp.transpose(w_p, (0, 2, 3, 1)).reshape(cout, 9 * cin_pad)
    return (w_f * scale).astype(MATMUL_DTYPE)


@jax.jit
def genblock_forward(x_nchw, w, params, noise1, noise2):
    """Pallas GenBlock forward: x (N,Cin,H,W), w (N,w_dim) -> (N,Cout,H,W)."""
    N, Cin, H, Wd = x_nchw.shape
    Cout = params["conv1_w"].shape[0]
    Wdim = w.shape[1]
    HW = H * Wd
    assert Cout % 8 == 0, "out_channels must be a multiple of 8 (sublane tile)"

    # Scales exactly as written in the PyTorch module.
    conv1_scale = (2.0 / Cin * 3 ** 2) ** 0.5
    conv2_scale = (2.0 / Cout * 3 ** 2) ** 0.5
    ws_scale = (2.0 / Wdim) ** 0.5

    # Lane-dense kernel I/O layout (N, C, H*W).  Channel padding only kicks in
    # for toy widths; production GenBlock widths are multiples of 8 (no-op).
    cin_pad = max(8, _round_up(Cin, 8))
    x = x_nchw.reshape(N, Cin, HW)
    if cin_pad != Cin:
        x = jnp.pad(x, ((0, 0), (0, cin_pad - Cin), (0, 0)))

    w1 = _flatten_conv_weight(params["conv1_w"], conv1_scale, cin_pad)
    w2 = _flatten_conv_weight(params["conv2_w"], conv2_scale, Cout)

    # Per-channel constants packed in one tile: [conv1_b, noise1_w, conv2_b, noise2_w].
    chanp = jnp.stack([params["conv1_b"], params["noise1_w"],
                       params["conv2_b"], params["noise2_w"]], axis=-1)      # (Cout, 4)

    # AdaIN WSLinear projections hoisted out of the kernel, packed per sample.
    wv = w * ws_scale
    style = jnp.stack([wv @ params["ss1_w"].T + params["ss1_b"],
                       wv @ params["sb1_w"].T + params["sb1_b"],
                       wv @ params["ss2_w"].T + params["ss2_b"],
                       wv @ params["sb2_w"].T + params["sb2_b"]], axis=-1)   # (N, Cout, 4)

    # Both noise maps in one per-sample slab -> one DMA instead of two.
    noise = jnp.concatenate([noise1.reshape(N, 1, HW),
                             noise2.reshape(N, 1, HW)], axis=1)              # (N, 2, HW)

    masks = _shift_masks(H, Wd)                                              # (4, HW)

    B = _batch_block(N)
    nb = N // B

    flops = 2 * N * HW * (Cout * 9 * cin_pad + Cout * 9 * Cout)
    bytes_accessed = (x.size * x.dtype.itemsize + masks.size * 4
                      + w1.size * w1.dtype.itemsize + w2.size * w2.dtype.itemsize
                      + chanp.size * 4 + noise.size * 4 + style.size * 4
                      + N * Cout * HW * 4)

    out = pl.pallas_call(
        _make_genblock_kernel(H, Wd, B),
        out_shape=jax.ShapeDtypeStruct((N, Cout, HW), jnp.float32),
        grid_spec=pltpu.PrefetchScalarGridSpec(
            num_scalar_prefetch=0,
            grid=(nb,),
            in_specs=[
                pl.BlockSpec((B, cin_pad, HW), lambda i: (i, 0, 0)),   # x block
                pl.BlockSpec((4, HW), lambda i: (0, 0)),               # shift masks
                pl.BlockSpec((Cout, 9 * cin_pad), lambda i: (0, 0)),   # conv1 weight
                pl.BlockSpec((Cout, 9 * Cout), lambda i: (0, 0)),      # conv2 weight
                pl.BlockSpec((Cout, 4), lambda i: (0, 0)),             # bias / noise-w
                pl.BlockSpec((B, 2, HW), lambda i: (i, 0, 0)),         # noise1+noise2
                pl.BlockSpec((B, Cout, 4), lambda i: (i, 0, 0)),       # packed styles
            ],
            out_specs=pl.BlockSpec((B, Cout, HW), lambda i: (i, 0, 0)),
        ),
        compiler_params=pltpu.CompilerParams(
            dimension_semantics=("parallel",)),   # v7x: 2 TCs split the grid
        cost_estimate=pl.CostEstimate(
            flops=flops, transcendentals=2 * N * Cout,
            bytes_accessed=bytes_accessed),
    )(x, masks, w1, w2, chanp, noise, style)

    return out.reshape(N, Cout, H, Wd)


def init_params(key, in_channels, out_channels, w_dim):
    """Synthetic parameters matching GenBlock.__init__ shapes (PyTorch layout)."""
    ks = jax.random.split(key, 14)
    p = {}
    p["conv1_w"] = jax.random.normal(ks[0], (out_channels, in_channels, 3, 3), jnp.float32)
    p["conv1_b"] = 0.1 * jax.random.normal(ks[1], (out_channels,), jnp.float32)
    p["conv2_w"] = jax.random.normal(ks[2], (out_channels, out_channels, 3, 3), jnp.float32)
    p["conv2_b"] = 0.1 * jax.random.normal(ks[3], (out_channels,), jnp.float32)
    # InjectNoise weight: PyTorch inits zeros(1,C,1,1); use small nonzero values
    # so the noise path is actually exercised by the reference check.
    p["noise1_w"] = 0.1 * jax.random.normal(ks[4], (out_channels,), jnp.float32)
    p["noise2_w"] = 0.1 * jax.random.normal(ks[5], (out_channels,), jnp.float32)
    p["ss1_w"] = jax.random.normal(ks[6], (out_channels, w_dim), jnp.float32)
    p["ss1_b"] = 0.1 * jax.random.normal(ks[7], (out_channels,), jnp.float32)
    p["sb1_w"] = jax.random.normal(ks[8], (out_channels, w_dim), jnp.float32)
    p["sb1_b"] = 0.1 * jax.random.normal(ks[9], (out_channels,), jnp.float32)
    p["ss2_w"] = jax.random.normal(ks[10], (out_channels, w_dim), jnp.float32)
    p["ss2_b"] = 0.1 * jax.random.normal(ks[11], (out_channels,), jnp.float32)
    p["sb2_w"] = jax.random.normal(ks[12], (out_channels, w_dim), jnp.float32)
    p["sb2_b"] = 0.1 * jax.random.normal(ks[13], (out_channels,), jnp.float32)
    return p


def genblock_reference(x, w, params, noise1, noise2):
    """Pure-JAX/XLA reference with the exact PyTorch GenBlock semantics (f32)."""
    Cin = x.shape[1]
    Cout = params["conv1_w"].shape[0]
    Wdim = w.shape[1]
    conv_scales = ((2.0 / Cin * 3 ** 2) ** 0.5, (2.0 / Cout * 3 ** 2) ** 0.5)
    ws_scale = (2.0 / Wdim) ** 0.5

    def stage(x, cw, cb, cscale, nw, noise, ssw, ssb, sbw, sbb):
        y = lax.conv_general_dilated(
            x * cscale, cw, (1, 1), ((1, 1), (1, 1)),
            dimension_numbers=("NCHW", "OIHW", "NCHW"),
            precision=lax.Precision.HIGHEST) + cb.reshape(1, -1, 1, 1)
        y = y + nw.reshape(1, -1, 1, 1) * noise                 # InjectNoise
        y = jnp.where(y >= 0, y, 0.2 * y)                       # LeakyReLU(0.2)
        mean = jnp.mean(y, axis=(2, 3), keepdims=True)          # InstanceNorm2d
        var = jnp.mean(jnp.square(y - mean), axis=(2, 3), keepdims=True)
        y = (y - mean) / jnp.sqrt(var + 1e-5)
        ss = (w * ws_scale) @ ssw.T + ssb                       # AdaIN
        sb = (w * ws_scale) @ sbw.T + sbb
        return ss[:, :, None, None] * y + sb[:, :, None, None]

    h = stage(x, params["conv1_w"], params["conv1_b"], conv_scales[0],
              params["noise1_w"], noise1,
              params["ss1_w"], params["ss1_b"], params["sb1_w"], params["sb1_b"])
    return stage(h, params["conv2_w"], params["conv2_b"], conv_scales[1],
                 params["noise2_w"], noise2,
                 params["ss2_w"], params["ss2_b"], params["sb2_w"], params["sb2_b"])


if __name__ == "__main__":
    N, Cin, Cout, H, W, WDIM = 2, 4, 8, 16, 16, 8

    key = jax.random.PRNGKey(0)
    k_x, k_w, k_n1, k_n2, k_p = jax.random.split(key, 5)

    x = jax.random.normal(k_x, (N, Cin, H, W), jnp.float32)      # NCHW, as PyTorch
    w = jax.random.normal(k_w, (N, WDIM), jnp.float32)           # style vector
    # TODO(synk): PyTorch InjectNoise draws torch.randn((N,1,H,W)) inside
    # forward; we pass deterministic noise in explicitly instead of sampling
    # in-kernel so the run is reproducible and checkable.
    noise1 = jax.random.normal(k_n1, (N, 1, H, W), jnp.float32)
    noise2 = jax.random.normal(k_n2, (N, 1, H, W), jnp.float32)

    params = init_params(k_p, Cin, Cout, WDIM)

    out = genblock_forward(x, w, params, noise1, noise2)
    out = jax.block_until_ready(out)

    assert out.shape == (N, Cout, H, W), out.shape
    assert bool(jnp.all(jnp.isfinite(out)))

    ref = genblock_reference(x, w, params, noise1, noise2)
    err = float(jnp.max(jnp.abs(out - ref)))
    tol = 2e-3 if MATMUL_DTYPE == jnp.float32 else 5e-2   # bf16 MXU is looser
    assert err < tol, f"max abs error vs reference: {err}"

    print("KERNEL_OK")
</pallas_src>

<mosaic_0001>
module attributes {stable_mosaic.version = 11 : i64} {
  func.func @kernel(%arg0: i32, %arg1: memref<1x8x256xf32, #tpu.memory_space<vmem>>, %arg2: memref<4x256xf32, #tpu.memory_space<vmem>>, %arg3: memref<8x72xf32, #tpu.memory_space<vmem>>, %arg4: memref<8x72xf32, #tpu.memory_space<vmem>>, %arg5: memref<8x4xf32, #tpu.memory_space<vmem>>, %arg6: memref<1x2x256xf32, #tpu.memory_space<vmem>>, %arg7: memref<1x8x4xf32, #tpu.memory_space<vmem>>, %arg8: memref<1x8x256xf32, #tpu.memory_space<vmem>>) attributes {dimension_semantics = [#tpu.dimension_semantics<parallel>], iteration_bounds = array<i64: 2>, scalar_prefetch = 0 : i64, scratch_operands = 0 : i64, tpu.core_type = #tpu.core_type<tc>, window_params = [{transform_indices = @transform_0, window_bounds = array<i64: 1, 8, 256>}, {pipeline_mode = #tpu.pipeline_mode<synchronous>, transform_indices = @transform_1, window_bounds = array<i64: 4, 256>}, {pipeline_mode = #tpu.pipeline_mode<synchronous>, transform_indices = @transform_2, window_bounds = array<i64: 8, 72>}, {pipeline_mode = #tpu.pipeline_mode<synchronous>, transform_indices = @transform_3, window_bounds = array<i64: 8, 72>}, {pipeline_mode = #tpu.pipeline_mode<synchronous>, transform_indices = @transform_4, window_bounds = array<i64: 8, 4>}, {transform_indices = @transform_5, window_bounds = array<i64: 1, 2, 256>}, {transform_indices = @transform_6, window_bounds = array<i64: 1, 8, 4>}, {transform_indices = @transform_7, window_bounds = array<i64: 1, 8, 256>}]} {
    %c0 = arith.constant 0 : index
    %c0_0 = arith.constant 0 : index
    %0 = vector.load %arg2[%c0, %c0_0] : memref<4x256xf32, #tpu.memory_space<vmem>>, vector<1x256xf32>
    %c1 = arith.constant 1 : index
    %c0_1 = arith.constant 0 : index
    %1 = vector.load %arg2[%c1, %c0_1] : memref<4x256xf32, #tpu.memory_space<vmem>>, vector<1x256xf32>
    %c2 = arith.constant 2 : index
    %c0_2 = arith.constant 0 : index
    %2 = vector.load %arg2[%c2, %c0_2] : memref<4x256xf32, #tpu.memory_space<vmem>>, vector<1x256xf32>
    %c3 = arith.constant 3 : index
    %c0_3 = arith.constant 0 : index
    %3 = vector.load %arg2[%c3, %c0_3] : memref<4x256xf32, #tpu.memory_space<vmem>>, vector<1x256xf32>
    %c0_4 = arith.constant 0 : index
    %c0_5 = arith.constant 0 : index
    %4 = vector.load %arg5[%c0_4, %c0_5] : memref<8x4xf32, #tpu.memory_space<vmem>>, vector<8x1xf32>
    %c0_6 = arith.constant 0 : index
    %c1_7 = arith.constant 1 : index
    %5 = vector.load %arg5[%c0_6, %c1_7] : memref<8x4xf32, #tpu.memory_space<vmem>>, vector<8x1xf32>
    %c0_8 = arith.constant 0 : index
    %c2_9 = arith.constant 2 : index
    %6 = vector.load %arg5[%c0_8, %c2_9] : memref<8x4xf32, #tpu.memory_space<vmem>>, vector<8x1xf32>
    %c0_10 = arith.constant 0 : index
    %c3_11 = arith.constant 3 : index
    %7 = vector.load %arg5[%c0_10, %c3_11] : memref<8x4xf32, #tpu.memory_space<vmem>>, vector<8x1xf32>
    %c0_12 = arith.constant 0 : index
    %c0_13 = arith.constant 0 : index
    %c0_14 = arith.constant 0 : index
    %8 = vector.load %arg6[%c0_12, %c0_13, %c0_14] : memref<1x2x256xf32, #tpu.memory_space<vmem>>, vector<1x2x256xf32>
    %9 = vector.shape_cast %8 : vector<1x2x256xf32> to vector<2x256xf32>
    %c0_15 = arith.constant 0 : index
    %c0_16 = arith.constant 0 : index
    %c0_17 = arith.constant 0 : index
    %10 = vector.load %arg7[%c0_15, %c0_16, %c0_17] : memref<1x8x4xf32, #tpu.memory_space<vmem>>, vector<1x8x4xf32>
    %11 = vector.shape_cast %10 : vector<1x8x4xf32> to vector<8x4xf32>
    %c0_18 = arith.constant 0 : index
    %c0_19 = arith.constant 0 : index
    %c0_20 = arith.constant 0 : index
    %12 = vector.load %arg1[%c0_18, %c0_19, %c0_20] : memref<1x8x256xf32, #tpu.memory_space<vmem>>, vector<1x8x256xf32>
    %13 = vector.shape_cast %12 : vector<1x8x256xf32> to vector<8x256xf32>
    %14 = vector.extract_strided_slice %9 {offsets = [0, 0], sizes = [1, 256], strides = [1, 1]} : vector<2x256xf32> to vector<1x256xf32>
    %15 = vector.extract_strided_slice %11 {offsets = [0, 0], sizes = [8, 1], strides = [1, 1]} : vector<8x4xf32> to vector<8x1xf32>
    %16 = vector.extract_strided_slice %11 {offsets = [0, 1], sizes = [8, 1], strides = [1, 1]} : vector<8x4xf32> to vector<8x1xf32>
    %c0_21 = arith.constant 0 : index
    %c0_22 = arith.constant 0 : index
    %17 = vector.load %arg3[%c0_21, %c0_22] : memref<8x72xf32, #tpu.memory_space<vmem>>, vector<8x72xf32>
    %c1_i32 = arith.constant 1 : i32
    %18 = tpu.dynamic_rotate %13 by %c1_i32 dim 1 : vector<8x256xf32>, i32 -> vector<8x256xf32>
    %19 = vector.broadcast %0 : vector<1x256xf32> to vector<8x256xf32>
    %20 = arith.mulf %19, %18 : vector<8x256xf32>
    %c255_i32 = arith.constant 255 : i32
    %21 = tpu.dynamic_rotate %13 by %c255_i32 dim 1 : vector<8x256xf32>, i32 -> vector<8x256xf32>
    %22 = vector.broadcast %1 : vector<1x256xf32> to vector<8x256xf32>
    %23 = arith.mulf %22, %21 : vector<8x256xf32>
    %c16_i32 = arith.constant 16 : i32
    %24 = tpu.dynamic_rotate %20 by %c16_i32 dim 1 : vector<8x256xf32>, i32 -> vector<8x256xf32>
    %25 = vector.broadcast %2 : vector<1x256xf32> to vector<8x256xf32>
    %26 = arith.mulf %25, %24 : vector<8x256xf32>
    %c16_i32_23 = arith.constant 16 : i32
    %27 = tpu.dynamic_rotate %13 by %c16_i32_23 dim 1 : vector<8x256xf32>, i32 -> vector<8x256xf32>
    %28 = vector.broadcast %2 : vector<1x256xf32> to vector<8x256xf32>
    %29 = arith.mulf %28, %27 : vector<8x256xf32>
    %c16_i32_24 = arith.constant 16 : i32
    %30 = tpu.dynamic_rotate %23 by %c16_i32_24 dim 1 : vector<8x256xf32>, i32 -> vector<8x256xf32>
    %31 = vector.broadcast %2 : vector<1x256xf32> to vector<8x256xf32>
    %32 = arith.mulf %31, %30 : vector<8x256xf32>
    %c240_i32 = arith.constant 240 : i32
    %33 = tpu.dynamic_rotate %20 by %c240_i32 dim 1 : vector<8x256xf32>, i32 -> vector<8x256xf32>
    %34 = vector.broadcast %3 : vector<1x256xf32> to vector<8x256xf32>
    %35 = arith.mulf %34, %33 : vector<8x256xf32>
    %c240_i32_25 = arith.constant 240 : i32
    %36 = tpu.dynamic_rotate %13 by %c240_i32_25 dim 1 : vector<8x256xf32>, i32 -> vector<8x256xf32>
    %37 = vector.broadcast %3 : vector<1x256xf32> to vector<8x256xf32>
    %38 = arith.mulf %37, %36 : vector<8x256xf32>
    %c240_i32_26 = arith.constant 240 : i32
    %39 = tpu.dynamic_rotate %23 by %c240_i32_26 dim 1 : vector<8x256xf32>, i32 -> vector<8x256xf32>
    %40 = vector.broadcast %3 : vector<1x256xf32> to vector<8x256xf32>
    %41 = arith.mulf %40, %39 : vector<8x256xf32>
    %42 = tpu.concatenate %26, %29, %32, %20, %13, %23, %35, %38, %41 in 0 : vector<8x256xf32>, vector<8x256xf32>, vector<8x256xf32>, vector<8x256xf32>, vector<8x256xf32>, vector<8x256xf32>, vector<8x256xf32>, vector<8x256xf32>, vector<8x256xf32> -> vector<72x256xf32>
    %cst = arith.constant dense<0.000000e+00> : vector<8x256xf32>
    %43 = tpu.matmul %17, %42, %cst {dimension_numbers = #tpu.dot_dimension_numbers<[1], [0], [0], [1], [0, 0, 1, 1], [], []>} : vector<8x72xf32>, vector<72x256xf32>, vector<8x256xf32> -> vector<8x256xf32>
    %44 = vector.broadcast %4 : vector<8x1xf32> to vector<8x256xf32>
    %45 = arith.addf %43, %44 : vector<8x256xf32>
    %46 = vector.broadcast %5 : vector<8x1xf32> to vector<8x256xf32>
    %47 = vector.broadcast %14 : vector<1x256xf32> to vector<8x256xf32>
    %48 = arith.mulf %46, %47 : vector<8x256xf32>
    %49 = arith.addf %45, %48 : vector<8x256xf32>
    %cst_27 = arith.constant 0.000000e+00 : f32
    %50 = vector.broadcast %cst_27 : f32 to vector<8x256xf32>
    %51 = arith.cmpf oge, %49, %50 : vector<8x256xf32>
    %cst_28 = arith.constant 2.000000e-01 : f32
    %52 = vector.broadcast %cst_28 : f32 to vector<8x256xf32>
    %53 = arith.mulf %52, %49 : vector<8x256xf32>
    %54 = arith.select %51, %49, %53 : vector<8x256xi1>, vector<8x256xf32>
    %cst_29 = arith.constant dense<0.000000e+00> : vector<8xf32>
    %55 = vector.multi_reduction <add>, %54, %cst_29 [1] : vector<8x256xf32> to vector<8xf32>
    %56 = vector.shape_cast %55 : vector<8xf32> to vector<8x1xf32>
    %cst_30 = arith.constant 3.906250e-03 : f32
    %57 = vector.broadcast %cst_30 : f32 to vector<8x1xf32>
    %58 = arith.mulf %56, %57 : vector<8x1xf32>
    %59 = vector.broadcast %58 : vector<8x1xf32> to vector<8x256xf32>
    %60 = arith.subf %54, %59 : vector<8x256xf32>
    %61 = arith.mulf %60, %60 : vector<8x256xf32>
    %cst_31 = arith.constant dense<0.000000e+00> : vector<8xf32>
    %62 = vector.multi_reduction <add>, %61, %cst_31 [1] : vector<8x256xf32> to vector<8xf32>
    %63 = vector.shape_cast %62 : vector<8xf32> to vector<8x1xf32>
    %cst_32 = arith.constant 3.906250e-03 : f32
    %64 = vector.broadcast %cst_32 : f32 to vector<8x1xf32>
    %65 = arith.mulf %63, %64 : vector<8x1xf32>
    %cst_33 = arith.constant 9.99999974E-6 : f32
    %66 = vector.broadcast %cst_33 : f32 to vector<8x1xf32>
    %67 = arith.addf %65, %66 : vector<8x1xf32>
    %68 = math.rsqrt %67 : vector<8x1xf32>
    %69 = vector.broadcast %68 : vector<8x1xf32> to vector<8x256xf32>
    %70 = arith.mulf %60, %69 : vector<8x256xf32>
    %71 = vector.broadcast %15 : vector<8x1xf32> to vector<8x256xf32>
    %72 = arith.mulf %71, %70 : vector<8x256xf32>
    %73 = vector.broadcast %16 : vector<8x1xf32> to vector<8x256xf32>
    %74 = arith.addf %72, %73 : vector<8x256xf32>
    %75 = vector.extract_strided_slice %9 {offsets = [1, 0], sizes = [1, 256], strides = [1, 1]} : vector<2x256xf32> to vector<1x256xf32>
    %76 = vector.extract_strided_slice %11 {offsets = [0, 2], sizes = [8, 1], strides = [1, 1]} : vector<8x4xf32> to vector<8x1xf32>
    %77 = vector.extract_strided_slice %11 {offsets = [0, 3], sizes = [8, 1], strides = [1, 1]} : vector<8x4xf32> to vector<8x1xf32>
    %c0_34 = arith.constant 0 : index
    %c0_35 = arith.constant 0 : index
    %78 = vector.load %arg4[%c0_34, %c0_35] : memref<8x72xf32, #tpu.memory_space<vmem>>, vector<8x72xf32>
    %c1_i32_36 = arith.constant 1 : i32
    %79 = tpu.dynamic_rotate %74 by %c1_i32_36 dim 1 : vector<8x256xf32>, i32 -> vector<8x256xf32>
    %80 = vector.broadcast %0 : vector<1x256xf32> to vector<8x256xf32>
    %81 = arith.mulf %80, %79 : vector<8x256xf32>
    %c255_i32_37 = arith.constant 255 : i32
    %82 = tpu.dynamic_rotate %74 by %c255_i32_37 dim 1 : vector<8x256xf32>, i32 -> vector<8x256xf32>
    %83 = vector.broadcast %1 : vector<1x256xf32> to vector<8x256xf32>
    %84 = arith.mulf %83, %82 : vector<8x256xf32>
    %c16_i32_38 = arith.constant 16 : i32
    %85 = tpu.dynamic_rotate %81 by %c16_i32_38 dim 1 : vector<8x256xf32>, i32 -> vector<8x256xf32>
    %86 = vector.broadcast %2 : vector<1x256xf32> to vector<8x256xf32>
    %87 = arith.mulf %86, %85 : vector<8x256xf32>
    %c16_i32_39 = arith.constant 16 : i32
    %88 = tpu.dynamic_rotate %74 by %c16_i32_39 dim 1 : vector<8x256xf32>, i32 -> vector<8x256xf32>
    %89 = vector.broadcast %2 : vector<1x256xf32> to vector<8x256xf32>
    %90 = arith.mulf %89, %88 : vector<8x256xf32>
    %c16_i32_40 = arith.constant 16 : i32
    %91 = tpu.dynamic_rotate %84 by %c16_i32_40 dim 1 : vector<8x256xf32>, i32 -> vector<8x256xf32>
    %92 = vector.broadcast %2 : vector<1x256xf32> to vector<8x256xf32>
    %93 = arith.mulf %92, %91 : vector<8x256xf32>
    %c240_i32_41 = arith.constant 240 : i32
    %94 = tpu.dynamic_rotate %81 by %c240_i32_41 dim 1 : vector<8x256xf32>, i32 -> vector<8x256xf32>
    %95 = vector.broadcast %3 : vector<1x256xf32> to vector<8x256xf32>
    %96 = arith.mulf %95, %94 : vector<8x256xf32>
    %c240_i32_42 = arith.constant 240 : i32
    %97 = tpu.dynamic_rotate %74 by %c240_i32_42 dim 1 : vector<8x256xf32>, i32 -> vector<8x256xf32>
    %98 = vector.broadcast %3 : vector<1x256xf32> to vector<8x256xf32>
    %99 = arith.mulf %98, %97 : vector<8x256xf32>
    %c240_i32_43 = arith.constant 240 : i32
    %100 = tpu.dynamic_rotate %84 by %c240_i32_43 dim 1 : vector<8x256xf32>, i32 -> vector<8x256xf32>
    %101 = vector.broadcast %3 : vector<1x256xf32> to vector<8x256xf32>
    %102 = arith.mulf %101, %100 : vector<8x256xf32>
    %103 = tpu.concatenate %87, %90, %93, %81, %74, %84, %96, %99, %102 in 0 : vector<8x256xf32>, vector<8x256xf32>, vector<8x256xf32>, vector<8x256xf32>, vector<8x256xf32>, vector<8x256xf32>, vector<8x256xf32>, vector<8x256xf32>, vector<8x256xf32> -> vector<72x256xf32>
    %cst_44 = arith.constant dense<0.000000e+00> : vector<8x256xf32>
    %104 = tpu.matmul %78, %103, %cst_44 {dimension_numbers = #tpu.dot_dimension_numbers<[1], [0], [0], [1], [0, 0, 1, 1], [], []>} : vector<8x72xf32>, vector<72x256xf32>, vector<8x256xf32> -> vector<8x256xf32>
    %105 = vector.broadcast %6 : vector<8x1xf32> to vector<8x256xf32>
    %106 = arith.addf %104, %105 : vector<8x256xf32>
    %107 = vector.broadcast %7 : vector<8x1xf32> to vector<8x256xf32>
    %108 = vector.broadcast %75 : vector<1x256xf32> to vector<8x256xf32>
    %109 = arith.mulf %107, %108 : vector<8x256xf32>
    %110 = arith.addf %106, %109 : vector<8x256xf32>
    %cst_45 = arith.constant 0.000000e+00 : f32
    %111 = vector.broadcast %cst_45 : f32 to vector<8x256xf32>
    %112 = arith.cmpf oge, %110, %111 : vector<8x256xf32>
    %cst_46 = arith.constant 2.000000e-01 : f32
    %113 = vector.broadcast %cst_46 : f32 to vector<8x256xf32>
    %114 = arith.mulf %113, %110 : vector<8x256xf32>
    %115 = arith.select %112, %110, %114 : vector<8x256xi1>, vector<8x256xf32>
    %cst_47 = arith.constant dense<0.000000e+00> : vector<8xf32>
    %116 = vector.multi_reduction <add>, %115, %cst_47 [1] : vector<8x256xf32> to vector<8xf32>
    %117 = vector.shape_cast %116 : vector<8xf32> to vector<8x1xf32>
    %cst_48 = arith.constant 3.906250e-03 : f32
    %118 = vector.broadcast %cst_48 : f32 to vector<8x1xf32>
    %119 = arith.mulf %117, %118 : vector<8x1xf32>
    %120 = vector.broadcast %119 : vector<8x1xf32> to vector<8x256xf32>
    %121 = arith.subf %115, %120 : vector<8x256xf32>
    %122 = arith.mulf %121, %121 : vector<8x256xf32>
    %cst_49 = arith.constant dense<0.000000e+00> : vector<8xf32>
    %123 = vector.multi_reduction <add>, %122, %cst_49 [1] : vector<8x256xf32> to vector<8xf32>
    %124 = vector.shape_cast %123 : vector<8xf32> to vector<8x1xf32>
    %cst_50 = arith.constant 3.906250e-03 : f32
    %125 = vector.broadcast %cst_50 : f32 to vector<8x1xf32>
    %126 = arith.mulf %124, %125 : vector<8x1xf32>
    %cst_51 = arith.constant 9.99999974E-6 : f32
    %127 = vector.broadcast %cst_51 : f32 to vector<8x1xf32>
    %128 = arith.addf %126, %127 : vector<8x1xf32>
    %129 = math.rsqrt %128 : vector<8x1xf32>
    %130 = vector.broadcast %129 : vector<8x1xf32> to vector<8x256xf32>
    %131 = arith.mulf %121, %130 : vector<8x256xf32>
    %132 = vector.broadcast %76 : vector<8x1xf32> to vector<8x256xf32>
    %133 = arith.mulf %132, %131 : vector<8x256xf32>
    %134 = vector.broadcast %77 : vector<8x1xf32> to vector<8x256xf32>
    %135 = arith.addf %133, %134 : vector<8x256xf32>
    %c0_52 = arith.constant 0 : index
    %c0_53 = arith.constant 0 : index
    %c0_54 = arith.constant 0 : index
    %136 = vector.load %arg8[%c0_52, %c0_53, %c0_54] : memref<1x8x256xf32, #tpu.memory_space<vmem>>, vector<1x8x256xf32>
    %137 = vector.shape_cast %136 : vector<1x8x256xf32> to vector<8x256xf32>
    %138 = vector.shape_cast %135 : vector<8x256xf32> to vector<1x8x256xf32>
    tpu.vector_store %arg8[%c0_52, %c0_53, %c0_54], %138 {strides = array<i32>} : memref<1x8x256xf32, #tpu.memory_space<vmem>>, vector<1x8x256xf32>,
    return
  }
  func.func @transform_0(%arg0: i32) -> (i32, i32, i32) {
    %c0_i32 = arith.constant 0 : i32
    %c0_i32_0 = arith.constant 0 : i32
    %c0_i32_1 = arith.constant 0 : i32
    return %arg0, %c0_i32, %c0_i32_0 : i32, i32, i32
  }
  func.func @transform_1(%arg0: i32) -> (i32, i32) {
    %c0_i32 = arith.constant 0 : i32
    %c0_i32_0 = arith.constant 0 : i32
    %c0_i32_1 = arith.constant 0 : i32
    return %c0_i32, %c0_i32_0 : i32, i32
  }
  func.func @transform_2(%arg0: i32) -> (i32, i32) {
    %c0_i32 = arith.constant 0 : i32
    %c0_i32_0 = arith.constant 0 : i32
    %c0_i32_1 = arith.constant 0 : i32
    return %c0_i32, %c0_i32_0 : i32, i32
  }
  func.func @transform_3(%arg0: i32) -> (i32, i32) {
    %c0_i32 = arith.constant 0 : i32
    %c0_i32_0 = arith.constant 0 : i32
    %c0_i32_1 = arith.constant 0 : i32
    return %c0_i32, %c0_i32_0 : i32, i32
  }
  func.func @transform_4(%arg0: i32) -> (i32, i32) {
    %c0_i32 = arith.constant 0 : i32
    %c0_i32_0 = arith.constant 0 : i32
    %c0_i32_1 = arith.constant 0 : i32
    return %c0_i32, %c0_i32_0 : i32, i32
  }
  func.func @transform_5(%arg0: i32) -> (i32, i32, i32) {
    %c0_i32 = arith.constant 0 : i32
    %c0_i32_0 = arith.constant 0 : i32
    %c0_i32_1 = arith.constant 0 : i32
    return %arg0, %c0_i32, %c0_i32_0 : i32, i32, i32
  }
  func.func @transform_6(%arg0: i32) -> (i32, i32, i32) {
    %c0_i32 = arith.constant 0 : i32
    %c0_i32_0 = arith.constant 0 : i32
    %c0_i32_1 = arith.constant 0 : i32
    return %arg0, %c0_i32, %c0_i32_0 : i32, i32, i32
  }
  func.func @transform_7(%arg0: i32) -> (i32, i32, i32) {
    %c0_i32 = arith.constant 0 : i32
    %c0_i32_0 = arith.constant 0 : i32
    %c0_i32_1 = arith.constant 0 : i32
    return %arg0, %c0_i32, %c0_i32_0 : i32, i32, i32
  }
}

</mosaic_0001>

<bundles_post_ra>
// kernel: genblock_forward.1
= control target key start
LH: loop header
LB: loop body
LE: loop exit
PB: predicated region body
PF: predicated region fallthrough
CT: control target
= control target key end

     0   :  { %s1005_s24 = smov 0   ;;  %s1290_s0 = inlined_call_operand.vmem [shape: f32[2,8,256], index: 0, kind: input, shape index: {}]   ;;  %s1291_s1 = inlined_call_operand.vmem [shape: f32[4,256], index: 1, kind: input, shape index: {}]   ;;  %s1292_s2 = inlined_call_operand.vmem [shape: f32[8,72], index: 2, kind: input, shape index: {}]   ;;  %s1293_s3 = inlined_call_operand.vmem [shape: f32[8,72], index: 3, kind: input, shape index: {}]   ;;  %s1294_s4 = inlined_call_operand.vmem [shape: f32[8,4], index: 4, kind: input, shape index: {}]   ;;  %s1295_s5 = inlined_call_operand.vmem [shape: f32[2,2,256], index: 5, kind: input, shape index: {}]   ;;  %s1296_s6 = inlined_call_operand.vmem [shape: f32[2,8,4], index: 6, kind: input, shape index: {}]   ;;  %s1297_s7 = inlined_call_operand.vmem [shape: f32[2,8,256], index: 7, kind: output, shape index: {}]  }
   0x1 LB: > { %s869_s25 = sadd.s32 4294967295, %s954_s24   ;;  %p873_p0 = scmp.ge.s32.totalorder %s954_s24, 1  ;;  %s954_s24 = sphi %s1005_s24, %s17_s24  }
   0x2   : > { %p256_p1 = scmp.lt.s32.totalorder %s954_s24, 3 }
   0x4   : > { %p257_p2 = pnand %p873_p0, %p256_p1 }
   0x5   : > { %p297_p3 = scmp.lt.s32.totalorder (!%p257_p2), %s869_s25, 1  ;;  %s956_s30 = smov (!%p257_p2), 127   ;;  %v333_v2 = vlaneseq (!%p257_p2)  ;;  %v316_v7 = vld [vmem:[%s1291_s1] ss:$4 sm:$0x3] (!%p257_p2)  ;;  %v960_v25 = vmov (!%p257_p2), 0.0  }
   0x6   : > { %260 = sbr.rel (%p257_p2) target bundleno = 1604 (0x644), region = 48  ;;  %s957_s8 = smov (!%p257_p2), 1   ;;  %v881_v12 = vld [vmem:[%s1291_s1 + $0x1] ss:$4 sm:$0x3] (!%p257_p2)  ;;  %516 = vmatprep.mubr.f32.mxu0 (!%p257_p2), %v960_v25  ;;  %721 = vmatprep.mubr.f32.mxu1 (!%p257_p2), %v960_v25  ;;  %v961_v26 = vmov (!%p257_p2), 1  }
   0x7   : > { %s958_s9 = smov (!%p257_p2), 16   ;;  %v1037_v3 = vshrl.u32 (!%p257_p2), %v333_v2, 7  ;;  %v1039_v4 = vand.u32 (!%p257_p2), 127, %v333_v2  ;;  %s959_s14 = smov (!%p257_p2), 112   ;;  %941 = vset.pattern.permute.xlu1 (!%p257_p2), %v961_v26  ;;  %v962_v27 = vmov (!%p257_p2), 0   ;;  %v1102_v28 = vld [vmem:[%s1294_s4] sm:$0xff] (!%p257_p2) }
   0x8   : > { %940 = vset.pattern.permute.xlu0 (!%p257_p2), %v962_v27  ;;  %v882_v31 = vld [vmem:[%s1291_s1 + $0x2] ss:$4 sm:$0x3] (!%p257_p2)  ;;  %v883_v52 = vld [vmem:[%s1291_s1 + $0x3] ss:$4 sm:$0x3] (!%p257_p2) }
   0x9   : > { %v1042_v5 = vsub.s32 (!%p257_p2), 0, %v1037_v3  ;;  %v1045_v6 = vsub.s32 (!%p257_p2), 1, %v1037_v3  ;;  %vm335_vm0 = vcmp.lt.s32.totalorder (!%p257_p2), %v1039_v4, 1  ;;  %vm355_vm1 = vcmp.lt.s32.totalorder (!%p257_p2), %v1039_v4, 127 }
   0xa   : > { %vm375_vm2 = vcmp.lt.s32.totalorder (!%p257_p2), %v1039_v4, 16  ;;  %vm411_vm3 = vcmp.lt.s32.totalorder (!%p257_p2), %v1039_v4, 112  ;;  %vm448_vm4 = vcmask (!%p257_p2), 588800   ;;  %v534_v25 = vsub.s32 (!%p257_p2), 2, %v1037_v3 }
   0xb   : > { %v1052_v10 = vrot.slane (!%p257_p2), %v316_v7, %v1042_v5  ;;  %v1055_v11 = vrot.slane (!%p257_p2), %v316_v7, %v1045_v6  ;;  %v1066_v17 = vrot.slane (!%p257_p2), %v881_v12, %v1042_v5  ;;  %v1069_v18 = vrot.slane (!%p257_p2), %v881_v12, %v1045_v6 }
   0xc   : > { %v1111_v32 = vrot.slane (!%p257_p2), %v882_v31, %v1042_v5  ;;  %v1114_v33 = vrot.slane (!%p257_p2), %v882_v31, %v1045_v6  ;;  %v1140_v57 = vrot.slane (!%p257_p2), %v883_v52, %v1042_v5  ;;  %v1143_v58 = vrot.slane (!%p257_p2), %v883_v52, %v1045_v6 }
   0xd   : > { %s1299_s25 = smov (!%p297_p3, %s869_s25), 1 }
   0xe   : > { %s888_s26 = sshll.u32 %s1299_s25, 4  ;;  %s889_s23 = sshll.u32 %s1299_s25, 2 }
   0xf   : > { %s301_s29 = scalar_lea.vmem %s1290_s0, %s888_s26  ;;  %s878_s10 = sshll.u32 %s1299_s25, 3 }
  0x10   : > { %v1021_v0 = vld [vmem:[%s301_s29] sm:$0xff]  ;;  %v1027_v1 = vld [vmem:[%s301_s29 + $0x8] sm:$0xff]  ;;  %s306_s29 = scalar_lea.vmem %s1295_s5, %s889_s23  ;;  %s310_s13 = scalar_lea.vmem %s1296_s6, %s878_s10 }
  0x11   : > { %351 = vrot.lane.b32.xlu1 %v1021_v0, %s956_s30  ;;  %329 = vrot.lane.b32.xlu0 %v1021_v0, %s957_s8  ;;  %s315_s15 = scalar_lea.vmem %s1297_s7, %s888_s26 }
  0x15   : > { %353 = vrot.lane.b32.xlu1 %v1027_v1, %s956_s30  ;;  %331 = vrot.lane.b32.xlu0 %v1027_v1, %s957_s8 }
  0x19   : > { %393 = vrot.lane.b32.xlu1 %v1027_v1, %s958_s9  ;;  %391 = vrot.lane.b32.xlu0 %v1021_v0, %s958_s9 }
  0x83   : > { %v352_v8 = vpop.permute.xlu1 %351  ;;  %v330_v9 = vpop.permute.xlu0 %329 }
  0x87   : > { %v354_v13 = vpop.permute.xlu1 %353  ;;  %v332_v14 = vpop.permute.xlu0 %331 }
  0x88   : > { %v336_v15 = vsel %vm335_vm0, %v330_v9, %v332_v14  ;;  %v337_v16 = vsel %vm335_vm0, %v332_v14, %v330_v9  ;;  %v356_v21 = vsel %vm355_vm1, %v352_v8, %v354_v13  ;;  %v357_v22 = vsel %vm355_vm1, %v354_v13, %v352_v8 }
  0x89   : > { %v1072_v19 = vmul.f32 %v1052_v10, %v337_v16  ;;  %v350_v20 = vmul.f32 %v1055_v11, %v336_v15  ;;  %v1083_v23 = vmul.f32 %v1066_v17, %v356_v21  ;;  %v370_v24 = vmul.f32 %v1069_v18, %v357_v22 }
  0x8b   : > { %371 = vrot.lane.b32.xlu0 %v1072_v19, %s958_s9  ;;  %373 = vrot.lane.b32.xlu1 %v350_v20, %s958_s9  ;;  %v394_v29 = vpop.permute.xlu1 %393  ;;  %v392_v30 = vpop.permute.xlu0 %391  ;;  %v899_v59 = vpack.c.bf16 %v370_v24, %v1027_v1  ;;  %v901_v8 = vpack.c.bf16 %v1083_v23, %v1021_v0 }
  0x8c   : > { %v395_v34 = vsel %vm375_vm2, %v392_v30, %v394_v29  ;;  %v396_v35 = vsel %vm375_vm2, %v394_v29, %v392_v30 }
  0x8d   : > { %v397_v40 = vmul.f32 %v396_v35, %v1111_v32  ;;  %v398_v43 = vmul.f32 %v395_v34, %v1114_v33 }
  0x8f   : > { %399 = vrot.lane.b32.xlu0 %v1083_v23, %s958_s9  ;;  %401 = vrot.lane.b32.xlu1 %v370_v24, %s958_s9 }
  0x93   : > { %407 = vrot.lane.b32.xlu0 %v1072_v19, %s959_s14  ;;  %409 = vrot.lane.b32.xlu1 %v350_v20, %s959_s14 }
  0x97   : > { %427 = vrot.lane.b32.xlu0 %v1021_v0, %s959_s14  ;;  %429 = vrot.lane.b32.xlu1 %v1027_v1, %s959_s14 }
  0x9b   : > { %435 = vrot.lane.b32.xlu0 %v1083_v23, %s959_s14  ;;  %437 = vrot.lane.b32.xlu1 %v370_v24, %s959_s14  ;;  %v328_v23 = vld [vmem:[%s1292_s2] sm:$0xff] }
  0x9c   : > { %v1174_v24 = vld [vmem:[%s306_s29] sm:$0xf] }
  0x9d   : > { %v531_v26 = vrot.slane %v1174_v24, %v1042_v5  ;;  %v535_v27 = vrot.slane %v1174_v24, %v534_v25  ;;  %v735_v4 = vrot.slane %v1174_v24, %v1045_v6 }
  0x9f   : > { %445 = vperm.xlu0 %940, %v1102_v28   ;;  %524 = vperm.xlu1 %941, %v1102_v28   ;;  %v541_v29 = vrot.slane %v531_v26, %v1042_v5  ;;  %v545_v30 = vrot.slane %v535_v27, %v1042_v5  ;;  %v1186_v5 = vld [vmem:[%s310_s13] sm:$0xff] }
  0xfd   : > { %v374_v36 = vpop.permute.xlu1 %373  ;;  %v372_v37 = vpop.permute.xlu0 %371 }
  0xfe   : > { %v376_v38 = vsel %vm375_vm2, %v372_v37, %v374_v36  ;;  %v377_v39 = vsel %vm375_vm2, %v374_v36, %v372_v37 }
  0xff   : > { %v389_v41 = vmul.f32 %v1111_v32, %v377_v39  ;;  %v390_v42 = vmul.f32 %v1114_v33, %v376_v38 }
 0x101   : > { %v402_v44 = vpop.permute.xlu1 %401  ;;  %v400_v45 = vpop.permute.xlu0 %399  ;;  %v891_v46 = vpack.c.bf16 %v398_v43, %v390_v42  ;;  %v893_v47 = vpack.c.bf16 %v397_v40, %v389_v41 }
 0x102   : > { %v403_v48 = vsel %vm375_vm2, %v400_v45, %v402_v44  ;;  %v404_v49 = vsel %vm375_vm2, %v402_v44, %v400_v45 }
 0x103   : > { %v405_v50 = vmul.f32 %v404_v49, %v1111_v32  ;;  %v406_v51 = vmul.f32 %v403_v48, %v1114_v33  ;;  %892 = vmatprep.subr.bf16.mxu0 %v891_v46 }
 0x104   : > { %894 = vmatpush1.bf16.msra.mxu0 %v893_v47 }
 0x105   : > { %v410_v53 = vpop.permute.xlu1 %409  ;;  %v408_v54 = vpop.permute.xlu0 %407  ;;  %v895_v55 = vpack.c.bf16 %v350_v20, %v406_v51  ;;  %v897_v56 = vpack.c.bf16 %v1072_v19, %v405_v50 }
 0x106   : > { %v412_v60 = vsel %vm411_vm3, %v408_v54, %v410_v53  ;;  %v413_v61 = vsel %vm411_vm3, %v410_v53, %v408_v54 }
 0x107   : > { %896 = vmatprep.subr.bf16.mxu0 %v895_v55  ;;  %v425_v1 = vmul.f32 %v1140_v57, %v412_v60  ;;  %v426_v9 = vmul.f32 %v1143_v58, %v413_v61 }
 0x108   : > { %898 = vmatpush1.bf16.msra.mxu0 %v897_v56 }
 0x109   : > { %v430_v62 = vpop.permute.xlu1 %429  ;;  %900 = vmatprep.subr.bf16.mxu0 %v899_v59  ;;  %v428_v63 = vpop.permute.xlu0 %427 }
 0x10a   : > { %v431_v2 = vsel %vm411_vm3, %v428_v63, %v430_v62  ;;  %v432_v7 = vsel %vm411_vm3, %v430_v62, %v428_v63 }
 0x10b   : > { %v433_v12 = vmul.f32 %v431_v2, %v1140_v57  ;;  %v434_v13 = vmul.f32 %v432_v7, %v1143_v58 }
 0x10c   : > { %902 = vmatpush1.bf16.msra.mxu0 %v901_v8 }
 0x10d   : > { %v438_v14 = vpop.permute.xlu1 %437  ;;  %v436_v15 = vpop.permute.xlu0 %435  ;;  %v903_v16 = vpack.c.bf16 %v434_v13, %v426_v9  ;;  %v905_v19 = vpack.c.bf16 %v433_v12, %v425_v1 }
 0x10e   : > { %v440_v20 = vsel %vm411_vm3, %v438_v14, %v436_v15  ;;  %v439_v0 = vsel %vm411_vm3, %v436_v15, %v438_v14 }
 0x10f   : > { %v442_v21 = vmul.f32 %v440_v20, %v1143_v58  ;;  %904 = vmatprep.subr.bf16.mxu0 %v903_v16  ;;  %v441_v22 = vmul.f32 %v439_v0, %v1140_v57 }
 0x110   : > { %906 = vmatpush1.bf16.msra.mxu0 %v905_v19 }
 0x111   : > { %468 = vmatprep.subr.mxu0 %v442_v21 }
 0x114   : > { %469 = vmatpush1.msra.mxu0 %v441_v22 }
 0x115   : > { %884 = vmatmul.mubr.msk.f32.vlgmr.msra.gmra.mrb[0].mxu0 %vm448_vm4, %v328_v23 }
 0x11e   : > { %v525_v31 = vpop.permute.xlu1 %524  ;;  %v446_v34 = vpop.permute.xlu0 %445 }
 0x11f   : > { %v546_v35 = vmul.f32 %v541_v29, %v525_v31  ;;  %v547_v36 = vmul.f32 %v545_v30, %v525_v31 }
 0x1e8   : > { %v518_v37 = vpop.f32.mrb[0].mxu0 }
 0x1e9   : > { %v519_v38 = vadd.f32 %v518_v37, %v446_v34  ;;  %v520_v39 = vpop.f32.mrb[1].mxu0 }
 0x1ea   : > { %v521_v40 = vadd.f32 %v520_v39, %v446_v34 }
 0x1eb   : > { %v548_v41 = vadd.f32 %v546_v35, %v519_v38 }
 0x1ec   : > { %v549_v42 = vadd.f32 %v547_v36, %v521_v40 }
 0x1ed   : > { %vm550_vm5 = vcmp.ge.f32.partialorder %v548_v41, 0.0  ;;  %v552_v43 = vmul.f32 0.2, %v548_v41 }
 0x1ee   : > { %vm551_vm6 = vcmp.ge.f32.partialorder %v549_v42, 0.0  ;;  %v553_v44 = vmul.f32 0.2, %v549_v42 }
 0x1ef   : > { %v554_v45 = vsel %vm550_vm5, %v548_v41, %v552_v43 }
 0x1f0   : > { %v555_v46 = vsel %vm551_vm6, %v549_v42, %v553_v44 }
 0x1f1   : > { %v556_v47 = vadd.f32 %v555_v46, %v554_v45 }
 0x1f3   : > { %557 = vadd.xlane.f32.xlu1 %v556_v47 }
 0x204   : > { %580 = vperm.xlu1 %941, %v1186_v5  }
 0x280   : > { %v558_v48 = vpop.xlane.xlu1 %557 }
 0x281   : > { %v559_v49 = vmul.f32 0.00390625, %v558_v48 }
 0x283   : > { %v560_v50 = vsub.f32 %v554_v45, %v559_v49  ;;  %v561_v51 = vsub.f32 %v555_v46, %v559_v49 }
 0x284   : > { %v581_v8 = vpop.permute.xlu1 %580 }
 0x285   : > { %v562_v52 = vmul.f32 %v560_v50, %v560_v50  ;;  %v563_v53 = vmul.f32 %v561_v51, %v561_v51 }
 0x287   : > { %v564_v54 = vadd.f32 %v563_v53, %v562_v52 }
 0x289   : > { %565 = vadd.xlane.f32.xlu0 %v564_v54 }
 0x29f   : > { %574 = vperm.xlu0 %940, %v1186_v5  }
 0x316   : > { %v566_v55 = vpop.xlane.xlu0 %565 }
 0x317   : > { %v567_v56 = vmul.f32 0.00390625, %v566_v55 }
 0x319   : > { %v568_v59 = vadd.f32 1e-05, %v567_v56 }
 0x31b   : > { %944 = vrsqrt.f32 %v568_v59 }
 0x31e   : > { %v575_v63 = vpop.permute.xlu0 %574 }
 0x325   : > { %v945_v60 = vpop.eup %944 }
 0x326   : > { %v570_v61 = vmul.f32 %v945_v60, %v560_v50  ;;  %v571_v62 = vmul.f32 %v945_v60, %v561_v51 }
 0x328   : > { %v577_v2 = vmul.f32 %v575_v63, %v570_v61  ;;  %v578_v7 = vmul.f32 %v575_v63, %v571_v62 }
 0x32a   : > { %v1190_v1 = vadd.f32 %v581_v8, %v577_v2  ;;  %v1192_v9 = vadd.f32 %v581_v8, %v578_v7 }
 0x32c   : > { %588 = vrot.lane.b32.xlu0 %v1192_v9, %s957_s8  ;;  %586 = vrot.lane.b32.xlu1 %v1190_v1, %s957_s8 }
 0x330   : > { %596 = vrot.lane.b32.xlu0 %v1192_v9, %s956_s30  ;;  %594 = vrot.lane.b32.xlu1 %v1190_v1, %s956_s30 }
 0x334   : > { %612 = vrot.lane.b32.xlu0 %v1192_v9, %s958_s9  ;;  %610 = vrot.lane.b32.xlu1 %v1190_v1, %s958_s9 }
 0x39e   : > { %v589_v12 = vpop.permute.xlu0 %588  ;;  %v587_v13 = vpop.permute.xlu1 %586 }
 0x39f   : > { %v590_v14 = vsel %vm335_vm0, %v587_v13, %v589_v12  ;;  %v591_v15 = vsel %vm335_vm0, %v589_v12, %v587_v13  ;;  %v585_v13 = vld [vmem:[%s1293_s3] sm:$0xff] }
 0x3a0   : > { %v592_v16 = vmul.f32 %v591_v15, %v1052_v10  ;;  %v593_v19 = vmul.f32 %v590_v14, %v1055_v11  ;;  %v963_v10 = vmov 2   ;;  %v964_v11 = vmov 3  }
 0x3a1   : > { %942 = vset.pattern.permute.xlu1 %v963_v10  ;;  %943 = vset.pattern.permute.xlu0 %v964_v11  ;;  %v738_v14 = vsub.s32 3, %v1037_v3 }
 0x3a2   : > { %v597_v20 = vpop.permute.xlu0 %596  ;;  %602 = vrot.lane.b32.xlu1 %v592_v16, %s958_s9  ;;  %604 = vrot.lane.b32.xlu0 %v593_v19, %s958_s9  ;;  %v595_v0 = vpop.permute.xlu1 %594 }
 0x3a3   : > { %v598_v21 = vsel %vm355_vm1, %v595_v0, %v597_v20  ;;  %v599_v22 = vsel %vm355_vm1, %v597_v20, %v595_v0  ;;  %v739_v15 = vrot.slane %v1174_v24, %v738_v14 }
 0x3a4   : > { %v600_v23 = vmul.f32 %v598_v21, %v1066_v17  ;;  %v601_v25 = vmul.f32 %v599_v22, %v1069_v18 }
 0x3a6   : > { %620 = vrot.lane.b32.xlu0 %v601_v25, %s958_s9  ;;  %618 = vrot.lane.b32.xlu1 %v600_v23, %s958_s9  ;;  %v613_v17 = vpop.permute.xlu0 %612  ;;  %v611_v18 = vpop.permute.xlu1 %610  ;;  %v915_v50 = vpack.c.bf16 %v601_v25, %v1192_v9  ;;  %v917_v55 = vpack.c.bf16 %v600_v23, %v1190_v1 }
 0x3a7   : > { %v614_v26 = vsel %vm375_vm2, %v611_v18, %v613_v17  ;;  %v615_v27 = vsel %vm375_vm2, %v613_v17, %v611_v18 }
 0x3a8   : > { %v616_v35 = vmul.f32 %v615_v27, %v1111_v32  ;;  %v617_v37 = vmul.f32 %v614_v26, %v1114_v33 }
 0x3aa   : > { %628 = vrot.lane.b32.xlu0 %v593_v19, %s959_s14  ;;  %626 = vrot.lane.b32.xlu1 %v592_v16, %s959_s14 }
 0x3ae   : > { %636 = vrot.lane.b32.xlu0 %v1192_v9, %s959_s14  ;;  %634 = vrot.lane.b32.xlu1 %v1190_v1, %s959_s14 }
 0x3b2   : > { %644 = vrot.lane.b32.xlu0 %v601_v25, %s959_s14  ;;  %642 = vrot.lane.b32.xlu1 %v600_v23, %s959_s14 }
 0x3b6   : > { %729 = vperm.xlu0 %943, %v1102_v28   ;;  %651 = vperm.xlu1 %942, %v1102_v28  }
 0x414   : > { %v605_v29 = vpop.permute.xlu0 %604  ;;  %v603_v30 = vpop.permute.xlu1 %602 }
 0x415   : > { %v606_v31 = vsel %vm375_vm2, %v603_v30, %v605_v29  ;;  %v607_v34 = vsel %vm375_vm2, %v605_v29, %v603_v30 }
 0x416   : > { %v608_v28 = vmul.f32 %v607_v34, %v1111_v32  ;;  %v609_v36 = vmul.f32 %v606_v31, %v1114_v33 }
 0x418   : > { %v621_v38 = vpop.permute.xlu0 %620  ;;  %v619_v39 = vpop.permute.xlu1 %618  ;;  %v907_v40 = vpack.c.bf16 %v617_v37, %v609_v36  ;;  %v909_v41 = vpack.c.bf16 %v616_v35, %v608_v28 }
 0x419   : > { %v622_v42 = vsel %vm375_vm2, %v619_v39, %v621_v38  ;;  %v623_v43 = vsel %vm375_vm2, %v621_v38, %v619_v39 }
 0x41a   : > { %v624_v44 = vmul.f32 %v623_v43, %v1111_v32  ;;  %v625_v45 = vmul.f32 %v622_v42, %v1114_v33  ;;  %908 = vmatprep.subr.bf16.mxu1 %v907_v40 }
 0x41b   : > { %910 = vmatpush1.bf16.msra.mxu1 %v909_v41 }
 0x41c   : > { %v629_v46 = vpop.permute.xlu0 %628  ;;  %v627_v47 = vpop.permute.xlu1 %626  ;;  %v911_v48 = vpack.c.bf16 %v593_v19, %v625_v45  ;;  %v913_v49 = vpack.c.bf16 %v592_v16, %v624_v44  ;;  %v749_v16 = vrot.slane %v739_v15, %v1045_v6 }
 0x41d   : > { %v630_v51 = vsel %vm411_vm3, %v627_v47, %v629_v46  ;;  %v631_v52 = vsel %vm411_vm3, %v629_v46, %v627_v47 }
 0x41e   : > { %912 = vmatprep.subr.bf16.mxu1 %v911_v48  ;;  %v632_v56 = vmul.f32 %v630_v51, %v1140_v57  ;;  %v633_v59 = vmul.f32 %v631_v52, %v1143_v58 }
 0x41f   : > { %914 = vmatpush1.bf16.msra.mxu1 %v913_v49 }
 0x420   : > { %v637_v53 = vpop.permute.xlu0 %636  ;;  %916 = vmatprep.subr.bf16.mxu1 %v915_v50  ;;  %v635_v32 = vpop.permute.xlu1 %634 }
 0x421   : > { %v638_v33 = vsel %vm411_vm3, %v635_v32, %v637_v53  ;;  %v639_v54 = vsel %vm411_vm3, %v637_v53, %v635_v32 }
 0x422   : > { %v640_v60 = vmul.f32 %v638_v33, %v1140_v57  ;;  %v641_v61 = vmul.f32 %v639_v54, %v1143_v58 }
 0x423   : > { %918 = vmatpush1.bf16.msra.mxu1 %v917_v55 }
 0x424   : > { %v645_v62 = vpop.permute.xlu0 %644  ;;  %v643_v63 = vpop.permute.xlu1 %642  ;;  %v919_v2 = vpack.c.bf16 %v641_v61, %v633_v59  ;;  %v921_v7 = vpack.c.bf16 %v640_v60, %v632_v56 }
 0x425   : > { %v647_v8 = vsel %vm411_vm3, %v645_v62, %v643_v63  ;;  %v646_v9 = vsel %vm411_vm3, %v643_v63, %v645_v62 }
 0x426   : > { %v649_v1 = vmul.f32 %v647_v8, %v1143_v58  ;;  %920 = vmatprep.subr.bf16.mxu1 %v919_v2  ;;  %v648_v12 = vmul.f32 %v646_v9, %v1140_v57  ;;  %v745_v58 = vrot.slane %v735_v4, %v1045_v6 }
 0x427   : > { %922 = vmatpush1.bf16.msra.mxu1 %v921_v7 }
 0x428   : > { %673 = vmatprep.subr.mxu1 %v649_v1 }
 0x42b   : > { %674 = vmatpush1.msra.mxu1 %v648_v12 }
 0x42c   : > { %885 = vmatmul.mubr.msk.f32.vlgmr.msra.gmra.mrb[0].mxu1 %vm448_vm4, %v585_v13 }
 0x435   : > { %v730_v19 = vpop.permute.xlu0 %729  ;;  %v652_v57 = vpop.permute.xlu1 %651 }
 0x436   : > { %v750_v20 = vmul.f32 %v745_v58, %v730_v19  ;;  %v751_v0 = vmul.f32 %v749_v16, %v730_v19 }
 0x4ff   : > { %v723_v21 = vpop.f32.mrb[0].mxu1 }
 0x500   : > { %v724_v22 = vadd.f32 %v723_v21, %v652_v57  ;;  %v725_v23 = vpop.f32.mrb[1].mxu1 }
 0x501   : > { %v726_v25 = vadd.f32 %v725_v23, %v652_v57 }
 0x502   : > { %v752_v10 = vadd.f32 %v750_v20, %v724_v22 }
 0x503   : > { %v753_v11 = vadd.f32 %v751_v0, %v726_v25 }
 0x504   : > { %vm754_vm7 = vcmp.ge.f32.partialorder %v752_v10, 0.0  ;;  %v756_v3 = vmul.f32 0.2, %v752_v10 }
 0x505   : > { %vm755_vm8 = vcmp.ge.f32.partialorder %v753_v11, 0.0  ;;  %v757_v17 = vmul.f32 0.2, %v753_v11 }
 0x506   : > { %v758_v18 = vsel %vm754_vm7, %v752_v10, %v756_v3 }
 0x507   : > { %v759_v24 = vsel %vm755_vm8, %v753_v11, %v757_v17 }
 0x508   : > { %v760_v26 = vadd.f32 %v759_v24, %v758_v18 }
 0x50a   : > { %761 = vadd.xlane.f32.xlu1 %v760_v26 }
 0x51b   : > { %777 = vperm.xlu1 %942, %v1186_v5  }
 0x597   : > { %v762_v6 = vpop.xlane.xlu1 %761 }
 0x598   : > { %v763_v27 = vmul.f32 0.00390625, %v762_v6 }
 0x59a   : > { %v764_v29 = vsub.f32 %v758_v18, %v763_v27  ;;  %v765_v30 = vsub.f32 %v759_v24, %v763_v27 }
 0x59b   : > { %v778_v41 = vpop.permute.xlu1 %777 }
 0x59c   : > { %v766_v31 = vmul.f32 %v764_v29, %v764_v29  ;;  %v767_v34 = vmul.f32 %v765_v30, %v765_v30 }
 0x59e   : > { %v768_v35 = vadd.f32 %v767_v34, %v766_v31 }
 0x5a0   : > { %769 = vadd.xlane.f32.xlu0 %v768_v35 }
 0x5b6   : > { %783 = vperm.xlu0 %943, %v1186_v5  }
 0x62d   : > { %v770_v28 = vpop.xlane.xlu0 %769 }
 0x62e   : > { %v771_v36 = vmul.f32 0.00390625, %v770_v28 }
 0x630   : > { %v772_v37 = vadd.f32 1e-05, %v771_v36 }
 0x632   : > { %946 = vrsqrt.f32 %v772_v37 }
 0x635   : > { %v784_v44 = vpop.permute.xlu0 %783 }
 0x63c   : > { %v947_v38 = vpop.eup %946 }
 0x63d   : > { %v774_v39 = vmul.f32 %v947_v38, %v764_v29  ;;  %v775_v40 = vmul.f32 %v947_v38, %v765_v30 }
 0x63f   : > { %v780_v42 = vmul.f32 %v778_v41, %v774_v39  ;;  %v781_v43 = vmul.f32 %v778_v41, %v775_v40 }
 0x641   : > { %v786_v45 = vadd.f32 %v784_v44, %v780_v42  ;;  %v787_v46 = vadd.f32 %v784_v44, %v781_v43 }
 0x643   : > { %788 = vst [vmem:[%s315_s15] sm:$0xff] %v786_v45  ;;  %789 = vst [vmem:[%s315_s15 + $0x8] sm:$0xff] %v787_v46 }
 0x644 PF: > { %s17_s24 = sadd.s32 1, %s954_s24  }
 0x645   : > { %p14_p4 = scmp.ge.s32.totalorder %s17_s24, 4  }
 0x647   :  { %16 = sbr.rel (!%p14_p4) target bundleno = 1 (0x1), region = 87 }

</bundles_post_ra>
